<compile_context>
chip_gen: v5e
topology: v5e:2x2
jax: 0.10.0
libtpu: 0.0.40
codegen_flags: <defaults>
</compile_context>

<pallas_src>
import jax
import jax.numpy as jnp
from jax.experimental import pallas as pl
from jax.experimental.pallas import tpu as pltpu


def _round_up(x, m):
    return ((x + m - 1) // m) * m


# ---------------------------------------------------------------------------
# Pallas kernels: relu(A @ W + shift), A/W bf16, f32 accumulation, f32 output.
# ---------------------------------------------------------------------------

def _mm_shift_relu_acc_kernel(a_ref, w_ref, shift_ref, o_ref, acc_ref):
    """Multi-K-step variant: accumulate over the K grid axis in an f32 VMEM scratch,
    then fuse (+shift, relu) into the final store."""
    @pl.when(pl.program_id(2) == 0)
    def _():
        acc_ref[...] = jnp.zeros_like(acc_ref)

    acc_ref[...] += jnp.dot(a_ref[...], w_ref[...],
                            preferred_element_type=jnp.float32)

    @pl.when(pl.program_id(2) == pl.num_programs(2) - 1)
    def _():
        y = acc_ref[...] + shift_ref[...]              # (1, tn) broadcast over rows
        o_ref[...] = jnp.maximum(y, 0.0).astype(o_ref.dtype)


def _mm_shift_relu_1k_kernel(a_ref, w_ref, shift_ref, o_ref):
    """Single-K-step variant: no scratch, no pl.when — dot + shift + relu fused."""
    y = jnp.dot(a_ref[...], w_ref[...], preferred_element_type=jnp.float32)
    o_ref[...] = jnp.maximum(y + shift_ref[...], 0.0).astype(o_ref.dtype)


# ---------------------------------------------------------------------------
# Tile selection.
# ---------------------------------------------------------------------------

def _select_kn_tiles(K, N, *, tn_max=512, tk_max=1024):
    """Static (per-module) tile choices for the K (reduction) and N (C_out) dims."""
    # N: lane-dense output; collapse the j axis when the padded width fits one tile,
    # so the im2col matrix A is never re-streamed from HBM.
    N128 = _round_up(N, 128)
    if N128 <= tn_max:
        tn, N_pad = N128, N128
    else:
        tn = 256 if (N128 % 256 == 0) else 128
        N_pad = N128
    # K: bf16 sublane pack => multiples of 16; when K must be split, balance the
    # K steps with 128-aligned tiles to minimize zero padding.
    K16 = _round_up(K, 16)
    if K16 <= tk_max:
        tk, K_pad = K16, K16
    else:
        K128 = _round_up(K, 128)
        n_steps = -(-K128 // tk_max)                    # ceil
        tk = _round_up(-(-K128 // n_steps), 128)        # balanced, 128-aligned
        K_pad = tk * n_steps
    return tn, N_pad, tk, K_pad


def _select_m_tile(M, n_tiles_n, *, tm_max=512):
    """M-tile choice (depends on input shape, known at trace time)."""
    M16 = _round_up(M, 16)
    tm = min(tm_max, M16)
    M_pad = _round_up(M16, tm)
    # v7x megacore: keep >=2 parallel tiles when the N axis collapsed to a single tile.
    if n_tiles_n == 1 and M_pad // tm == 1 and M_pad >= 512:
        half = M_pad // 2
        if half % 16 == 0:
            tm = half
    return tm, M_pad


# ---------------------------------------------------------------------------
# Host-side wrapper around pallas_call.
# ---------------------------------------------------------------------------

def _matmul_shift_relu(a_bf16, w_p, s_p, M, N, *, tm, tn, tk, M_pad, K_pad, N_pad):
    """relu(a @ w + shift).

    a_bf16 : [M, K]        bf16 (unpadded im2col patches)
    w_p    : [K_pad, N_pad] bf16 (BN-folded, padded weight)
    s_p    : [1, N_pad]     f32  (BN shift, padded)
    Returns [M, N] f32.
    """
    K = a_bf16.shape[1]
    a_p = a_bf16 if (M_pad == M and K_pad == K) else jnp.pad(
        a_bf16, ((0, M_pad - M), (0, K_pad - K)))

    n_i, n_j, n_k = M_pad // tm, N_pad // tn, K_pad // tk

    cost = pl.CostEstimate(
        flops=2 * M_pad * K_pad * N_pad,
        transcendentals=0,
        bytes_accessed=(2 * n_j * M_pad * K_pad        # A streamed once per j tile
                        + 2 * n_i * K_pad * N_pad      # W streamed once per i tile
                        + 4 * M_pad * N_pad            # f32 output write
                        + 4 * N_pad),                  # shift
    )

    if n_k == 1:
        # Fast path: K fits one tile -> no accumulator scratch, no pl.when branches.
        out = pl.pallas_call(
            _mm_shift_relu_1k_kernel,
            out_shape=jax.ShapeDtypeStruct((M_pad, N_pad), jnp.float32),
            grid_spec=pltpu.PrefetchScalarGridSpec(
                num_scalar_prefetch=0,
                grid=(n_i, n_j),
                in_specs=[
                    pl.BlockSpec((tm, tk), lambda i, j: (i, 0)),
                    pl.BlockSpec((tk, tn), lambda i, j: (0, j)),
                    pl.BlockSpec((1, tn), lambda i, j: (0, j)),
                ],
                out_specs=pl.BlockSpec((tm, tn), lambda i, j: (i, j)),
            ),
            compiler_params=pltpu.CompilerParams(
                dimension_semantics=("parallel", "parallel")),
            cost_estimate=cost,
        )(a_p, w_p, s_p)
    else:
        out = pl.pallas_call(
            _mm_shift_relu_acc_kernel,
            out_shape=jax.ShapeDtypeStruct((M_pad, N_pad), jnp.float32),
            grid_spec=pltpu.PrefetchScalarGridSpec(
                num_scalar_prefetch=0,
                grid=(n_i, n_j, n_k),
                in_specs=[
                    pl.BlockSpec((tm, tk), lambda i, j, k: (i, k)),
                    pl.BlockSpec((tk, tn), lambda i, j, k: (k, j)),
                    pl.BlockSpec((1, tn), lambda i, j, k: (0, j)),   # reused across i, k
                ],
                out_specs=pl.BlockSpec((tm, tn), lambda i, j, k: (i, j)),
                scratch_shapes=[pltpu.VMEM((tm, tn), jnp.float32)],
            ),
            compiler_params=pltpu.CompilerParams(
                dimension_semantics=("parallel", "parallel", "arbitrary")),
            cost_estimate=cost,
        )(a_p, w_p, s_p)

    return out[:M, :N]


def _im2col(x, kh, kw, pad):
    """x: [N, C, H, W] -> patches [N*H_out*W_out, C*kh*kw] (stride 1).
    Column order per output pixel is (C_in, KH, KW) to match OIHW flattening."""
    n, c, h, w = x.shape
    xp = jnp.pad(x, ((0, 0), (0, 0), (pad, pad), (pad, pad)))
    h_out = h + 2 * pad - kh + 1
    w_out = w + 2 * pad - kw + 1
    rows = []
    for ki in range(kh):
        cols = []
        for kj in range(kw):
            cols.append(xp[:, :, ki:ki + h_out, kj:kj + w_out])    # [N, C, H_out, W_out]
        rows.append(jnp.stack(cols, axis=2))                        # [N, C, kw, H_out, W_out]
    patches = jnp.stack(rows, axis=2)                               # [N, C, kh, kw, H_out, W_out]
    patches = jnp.transpose(patches, (0, 4, 5, 1, 2, 3))            # [N, H_out, W_out, C, kh, kw]
    return patches.reshape(n * h_out * w_out, c * kh * kw), (n, h_out, w_out)


class BasicConv2dPallas:
    """Mirrors pytorch/aux_nets.py::BasicConv2d (eval-mode BN) with deterministic params."""

    def __init__(self, in_channels, out_channels, kernel_size=3, padding=1, key=None):
        if key is None:
            key = jax.random.PRNGKey(42)
        k1, k2, k3, k4, k5 = jax.random.split(key, 5)
        kh = kw = kernel_size
        fan_in = in_channels * kh * kw
        # Conv2d weight, OIHW, bias=False
        self.weight = jax.random.normal(
            k1, (out_channels, in_channels, kh, kw), jnp.float32) / jnp.sqrt(fan_in)
        # BatchNorm2d params (eval-mode running stats), eps=0.001
        self.gamma = 1.0 + 0.1 * jax.random.normal(k2, (out_channels,), jnp.float32)
        self.beta = 0.1 * jax.random.normal(k3, (out_channels,), jnp.float32)
        self.running_mean = 0.1 * jax.random.normal(k4, (out_channels,), jnp.float32)
        self.running_var = jnp.abs(
            1.0 + 0.1 * jax.random.normal(k5, (out_channels,), jnp.float32))
        self.eps = 0.001
        self.kh, self.kw, self.pad = kh, kw, padding
        self.out_channels = out_channels

        # --- Precompute BN-folded, padded, bf16-cast weight + f32 shift (static). ---
        K = in_channels * kh * kw
        inv_std = 1.0 / jnp.sqrt(self.running_var + self.eps)
        scale = self.gamma * inv_std                                # [C_out]
        shift = (self.beta - self.running_mean * scale).reshape(1, out_channels)
        wm = self.weight.reshape(out_channels, -1).T * scale[None, :]   # [K, C_out] f32

        tn, N_pad, tk, K_pad = _select_kn_tiles(K, out_channels)
        self._tn, self._N_pad, self._tk, self._K_pad = tn, N_pad, tk, K_pad
        self._wm_p = jnp.pad(
            wm, ((0, K_pad - K), (0, N_pad - out_channels))).astype(jnp.bfloat16)
        self._shift_p = jnp.pad(shift, ((0, 0), (0, N_pad - out_channels)))  # f32

        # Fuse im2col glue + Pallas kernel + layout transpose into one jit.
        self._forward = jax.jit(self._forward_impl)

    def _forward_impl(self, x):
        c_out = self.out_channels
        # bf16 patches: halves HBM traffic of the materialized im2col matrix.
        a, (n, h_out, w_out) = _im2col(x.astype(jnp.bfloat16), self.kh, self.kw, self.pad)
        M = a.shape[0]
        tm, M_pad = _select_m_tile(M, self._N_pad // self._tn)
        y = _matmul_shift_relu(
            a, self._wm_p, self._shift_p, M, c_out,
            tm=tm, tn=self._tn, tk=self._tk,
            M_pad=M_pad, K_pad=self._K_pad, N_pad=self._N_pad)       # [M, C_out] f32
        y = y.reshape(n, h_out, w_out, c_out)
        return jnp.transpose(y, (0, 3, 1, 2))                        # NHWC -> NCHW boundary

    def __call__(self, x):
        return self._forward(x)

    def reference(self, x):
        """Pure-JAX f32 reference (lax conv + BN + relu) for validation."""
        conv = jax.lax.conv_general_dilated(
            x, self.weight, window_strides=(1, 1),
            padding=((self.pad, self.pad), (self.pad, self.pad)),
            dimension_numbers=("NCHW", "OIHW", "NCHW"))
        inv_std = 1.0 / jnp.sqrt(self.running_var + self.eps)
        scale = (self.gamma * inv_std)[None, :, None, None]
        shift = (self.beta - self.running_mean * self.gamma * inv_std)[None, :, None, None]
        return jnp.maximum(conv * scale + shift, 0.0)


if __name__ == "__main__":
    key = jax.random.PRNGKey(0)
    # Small shapes consistent with the module: NCHW input.
    N, C_in, H, W = 2, 4, 16, 16
    C_out = 8
    x = jax.random.normal(key, (N, C_in, H, W), jnp.float32)

    mod = BasicConv2dPallas(C_in, C_out, kernel_size=3, padding=1,
                            key=jax.random.PRNGKey(1))

    out = mod(x)
    out = jax.block_until_ready(out)

    ref = mod.reference(x)
    assert out.shape == (N, C_out, H, W), out.shape
    # bf16 operands with f32 accumulation: relax tolerance vs. the f32 reference.
    max_err = float(jnp.max(jnp.abs(out - ref)))
    assert jnp.allclose(out, ref, atol=5e-2, rtol=5e-2), max_err

    print("KERNEL_OK")
</pallas_src>

<mosaic_0001>
module attributes {stable_mosaic.version = 11 : i64} {
  func.func @_mm_shift_relu_1k_kernel(%arg0: i32, %arg1: i32, %arg2: memref<256x48xbf16, #tpu.memory_space<vmem>>, %arg3: memref<48x128xbf16, #tpu.memory_space<vmem>>, %arg4: memref<1x128xf32, #tpu.memory_space<vmem>>, %arg5: memref<256x128xf32, #tpu.memory_space<vmem>>) attributes {dimension_semantics = [#tpu.dimension_semantics<parallel>, #tpu.dimension_semantics<parallel>], iteration_bounds = array<i64: 2, 1>, scalar_prefetch = 0 : i64, scratch_operands = 0 : i64, tpu.core_type = #tpu.core_type<tc>, window_params = [{transform_indices = @transform_0, window_bounds = array<i64: 256, 48>}, {transform_indices = @transform_1, window_bounds = array<i64: 48, 128>}, {transform_indices = @transform_2, window_bounds = array<i64: 1, 128>}, {transform_indices = @transform_3, window_bounds = array<i64: 256, 128>}]} {
    %c0 = arith.constant 0 : index
    %c0_0 = arith.constant 0 : index
    %0 = vector.load %arg2[%c0, %c0_0] : memref<256x48xbf16, #tpu.memory_space<vmem>>, vector<256x48xbf16>
    %c0_1 = arith.constant 0 : index
    %c0_2 = arith.constant 0 : index
    %1 = vector.load %arg3[%c0_1, %c0_2] : memref<48x128xbf16, #tpu.memory_space<vmem>>, vector<48x128xbf16>
    %cst = arith.constant dense<0.000000e+00> : vector<256x128xf32>
    %2 = tpu.matmul %0, %1, %cst {dimension_numbers = #tpu.dot_dimension_numbers<[1], [0], [0], [1], [0, 0, 1, 1], [], []>} : vector<256x48xbf16>, vector<48x128xbf16>, vector<256x128xf32> -> vector<256x128xf32>
    %c0_3 = arith.constant 0 : index
    %c0_4 = arith.constant 0 : index
    %3 = vector.load %arg4[%c0_3, %c0_4] : memref<1x128xf32, #tpu.memory_space<vmem>>, vector<1x128xf32>
    %4 = vector.broadcast %3 : vector<1x128xf32> to vector<256x128xf32>
    %5 = arith.addf %2, %4 : vector<256x128xf32>
    %cst_5 = arith.constant 0.000000e+00 : f32
    %6 = vector.broadcast %cst_5 : f32 to vector<256x128xf32>
    %7 = arith.maximumf %5, %6 : vector<256x128xf32>
    %c0_6 = arith.constant 0 : index
    %c0_7 = arith.constant 0 : index
    %8 = vector.load %arg5[%c0_6, %c0_7] : memref<256x128xf32, #tpu.memory_space<vmem>>, vector<256x128xf32>
    tpu.vector_store %arg5[%c0_6, %c0_7], %7 {strides = array<i32>} : memref<256x128xf32, #tpu.memory_space<vmem>>, vector<256x128xf32>,
    return
  }
  func.func @transform_0(%arg0: i32, %arg1: i32) -> (i32, i32) {
    %c0_i32 = arith.constant 0 : i32
    %c0_i32_0 = arith.constant 0 : i32
    return %arg0, %c0_i32 : i32, i32
  }
  func.func @transform_1(%arg0: i32, %arg1: i32) -> (i32, i32) {
    %c0_i32 = arith.constant 0 : i32
    %c0_i32_0 = arith.constant 0 : i32
    return %c0_i32, %arg1 : i32, i32
  }
  func.func @transform_2(%arg0: i32, %arg1: i32) -> (i32, i32) {
    %c0_i32 = arith.constant 0 : i32
    %c0_i32_0 = arith.constant 0 : i32
    return %c0_i32, %arg1 : i32, i32
  }
  func.func @transform_3(%arg0: i32, %arg1: i32) -> (i32, i32) {
    %c0_i32 = arith.constant 0 : i32
    return %arg0, %arg1 : i32, i32
  }
}

</mosaic_0001>

<bundles_post_ra>
// kernel: _forward_impl.1
= control target key start
LH: loop header
LB: loop body
LE: loop exit
PB: predicated region body
PF: predicated region fallthrough
CT: control target
= control target key end

     0   :  { %s872_s12 = smov 0   ;;  %s874_s13 = smov 0   ;;  %s1023_s0 = inlined_call_operand.vmem [shape: bf16[512,48], index: 0, kind: input, shape index: {}]   ;;  %s1024_s1 = inlined_call_operand.vmem [shape: bf16[48,128], index: 1, kind: input, shape index: {}]   ;;  %s1025_s2 = inlined_call_operand.vmem [shape: f32[1,128], index: 2, kind: input, shape index: {}]   ;;  %s1026_s3 = inlined_call_operand.vmem [shape: f32[512,128], index: 3, kind: output, shape index: {}]  }
   0x1   :  { %s876_s14 = smov 0  }
   0x2 LB: > { %s25_s15 = sadd.s32 1, %s846_s13  ;;  %p676_p0 = scmp.ge.s32.totalorder %s850_s14, 1  ;;  %s850_s14 = sphi %s876_s14, %s13_s14   ;;  %s846_s13 = sphi %s874_s13, %s1028_s13   ;;  %s842_s12 = sphi %s872_s12, %s1027_s12  }
   0x3   : > { %p27_p1 = scmp.ge.s32.totalorder %s25_s15, 2  ;;  %p169_p2 = scmp.lt.s32.totalorder %s850_s14, 3 }
   0x5   : > { %s1030_s15 = smov (%p27_p1, %s25_s15), 0  ;;  %p170_p3 = pnand %p676_p0, %p169_p2 }
   0x6   : > { %s677_s18 = sshll.u32 (!%p170_p3), %s842_s12, 5 }
   0x7   : > { %173 = sbr.rel (%p170_p3) target bundleno = 219 (0xdb), region = 32  ;;  %p204_p4 = scmp.lt.s32.totalorder (!%p170_p3), %s677_s18, 63 }
   0xc   : > { %v793_v0 = vld [vmem:[%s1024_s1 + $0x10] sm:$0xff]  ;;  %v792_v1 = vld [vmem:[%s1024_s1 + $0x8] sm:$0xff]  ;;  %s1032_s18 = smov (!%p204_p4, %s677_s18), 63  ;;  %v791_v2 = vld [vmem:[%s1024_s1] sm:$0xff]  ;;  %vm366_vm0 = vcmask 392192  }
   0xd   : > { %420 = vmatpush.bf16.msra.mxu0 %v793_v0  ;;  %794 = vmatpush.bf16.msra.mxu1 %v793_v0  ;;  %s678_s21 = sshll.u32 %s1032_s18, 2  ;;  %v942_v19 = vld [vmem:[%s1025_s2] ss:$0 sm:$0xff]  ;;  %s680_s29 = sshll.u32 %s1032_s18, 3 }
   0xe   : > { %795 = vmatpush.bf16.msra.mxu2 %v793_v0  ;;  %796 = vmatpush.bf16.msra.mxu3 %v793_v0  ;;  %s905_s26 = scalar_lea.vmem %s1023_s0, %s678_s21  ;;  %s950_s5 = scalar_lea.vmem %s1026_s3, %s680_s29 }
   0xf   : > { %v775_v3 = vld [vmem:[%s905_s26] sm:$0xff]  ;;  %v776_v7 = vld [vmem:[%s905_s26 + $0x8] sm:$0xff]  ;;  %v777_v11 = vld [vmem:[%s905_s26 + $0x10] sm:$0xff] }
  0x10   : > { %v779_v4 = vld [vmem:[%s905_s26 + $0x20] sm:$0xff]  ;;  %v780_v8 = vld [vmem:[%s905_s26 + $0x28] sm:$0xff]  ;;  %v781_v12 = vld [vmem:[%s905_s26 + $0x30] sm:$0xff] }
  0x11   : > { %421 = vmatpush.bf16.msra.mxu0 %v792_v1  ;;  %797 = vmatpush.bf16.msra.mxu1 %v792_v1  ;;  %v783_v5 = vld [vmem:[%s905_s26 + $0x40] sm:$0xff]  ;;  %v784_v9 = vld [vmem:[%s905_s26 + $0x48] sm:$0xff]  ;;  %v785_v13 = vld [vmem:[%s905_s26 + $0x50] sm:$0xff] }
  0x12   : > { %798 = vmatpush.bf16.msra.mxu2 %v792_v1  ;;  %799 = vmatpush.bf16.msra.mxu3 %v792_v1  ;;  %v787_v6 = vld [vmem:[%s905_s26 + $0x60] sm:$0xff]  ;;  %v788_v10 = vld [vmem:[%s905_s26 + $0x68] sm:$0xff]  ;;  %v789_v14 = vld [vmem:[%s905_s26 + $0x70] sm:$0xff] }
  0x13   : > { %v778_v15 = vld [vmem:[%s905_s26 + $0x18] sm:$0xff] }
  0x14   : > { %v782_v16 = vld [vmem:[%s905_s26 + $0x38] sm:$0xff] }
  0x15   : > { %422 = vmatpush.bf16.msra.mxu0 %v791_v2  ;;  %800 = vmatpush.bf16.msra.mxu1 %v791_v2  ;;  %v786_v17 = vld [vmem:[%s905_s26 + $0x58] sm:$0xff] }
  0x16   : > { %801 = vmatpush.bf16.msra.mxu2 %v791_v2  ;;  %802 = vmatpush.bf16.msra.mxu3 %v791_v2  ;;  %v790_v18 = vld [vmem:[%s905_s26 + $0x78] sm:$0xff] }
  0x18   : > { %757 = vmatmul.msk.bf16.vlgmr.msra.gmra.mxu0 %vm366_vm0, %v775_v3  ;;  %761 = vmatmul.msk.bf16.vlgmr.msra.gmra.mxu1 %vm366_vm0, %v779_v4 }
  0x19   : > { %765 = vmatmul.msk.bf16.vlgmr.msra.gmra.mxu2 %vm366_vm0, %v783_v5  ;;  %769 = vmatmul.msk.bf16.vlgmr.msra.gmra.mxu3 %vm366_vm0, %v787_v6 }
  0x28   : > { %758 = vmatmul.msk.bf16.gmra.mxu0 %vm366_vm0, %v776_v7  ;;  %762 = vmatmul.msk.bf16.gmra.mxu1 %vm366_vm0, %v780_v8 }
  0x29   : > { %766 = vmatmul.msk.bf16.gmra.mxu2 %vm366_vm0, %v784_v9  ;;  %770 = vmatmul.msk.bf16.gmra.mxu3 %vm366_vm0, %v788_v10 }
  0x38   : > { %759 = vmatmul.msk.bf16.gmra.mxu0 %vm366_vm0, %v777_v11  ;;  %763 = vmatmul.msk.bf16.gmra.mxu1 %vm366_vm0, %v781_v12 }
  0x39   : > { %767 = vmatmul.msk.bf16.gmra.mxu2 %vm366_vm0, %v785_v13  ;;  %771 = vmatmul.msk.bf16.gmra.mxu3 %vm366_vm0, %v789_v14 }
  0x48   : > { %760 = vmatmul.msk.bf16.gmra.mxu0 %vm366_vm0, %v778_v15  ;;  %764 = vmatmul.msk.bf16.gmra.mxu1 %vm366_vm0, %v782_v16 }
  0x49   : > { %768 = vmatmul.msk.bf16.gmra.mxu2 %vm366_vm0, %v786_v17  ;;  %772 = vmatmul.msk.bf16.gmra.mxu3 %vm366_vm0, %v790_v18 }
  0x95   : > { %v424_v20 = vpop.f32.mrf.mxu0  ;;  %v444_v21 = vpop.f32.mrf.mxu1 }
  0x96   : > { %v425_v22 = vadd.f32 %v942_v19, %v424_v20  ;;  %v445_v23 = vadd.f32 %v942_v19, %v444_v21 }
  0x98   : > { %v504_v24 = vmax.f32 %v425_v22, 0.0  ;;  %v512_v25 = vmax.f32 %v445_v23, 0.0 }
  0x9a   : > { %536 = vst [vmem:[%s950_s5] sm:$0xff] %v504_v24 }
  0x9b   : > { %544 = vst [vmem:[%s950_s5 + $0x40] sm:$0xff] %v512_v25 }
  0x9c   : > { %v464_v26 = vpop.f32.mrf.mxu2  ;;  %v484_v27 = vpop.f32.mrf.mxu3 }
  0x9d   : > { %v465_v28 = vadd.f32 %v942_v19, %v464_v26  ;;  %v485_v29 = vadd.f32 %v942_v19, %v484_v27  ;;  %v426_v30 = vpop.f32.mrf.mxu0  ;;  %v446_v31 = vpop.f32.mrf.mxu1 }
  0x9e   : > { %v427_v32 = vadd.f32 %v942_v19, %v426_v30  ;;  %v447_v33 = vadd.f32 %v942_v19, %v446_v31 }
  0x9f   : > { %v520_v34 = vmax.f32 %v465_v28, 0.0  ;;  %v528_v35 = vmax.f32 %v485_v29, 0.0 }
  0xa0   : > { %v505_v36 = vmax.f32 %v427_v32, 0.0  ;;  %v513_v37 = vmax.f32 %v447_v33, 0.0 }
  0xa1   : > { %552 = vst [vmem:[%s950_s5 + $0x80] sm:$0xff] %v520_v34 }
  0xa2   : > { %560 = vst [vmem:[%s950_s5 + $0xc0] sm:$0xff] %v528_v35 }
  0xa3   : > { %537 = vst [vmem:[%s950_s5 + $0x8] sm:$0xff] %v505_v36 }
  0xa4   : > { %545 = vst [vmem:[%s950_s5 + $0x48] sm:$0xff] %v513_v37  ;;  %v466_v38 = vpop.f32.mrf.mxu2  ;;  %v486_v39 = vpop.f32.mrf.mxu3 }
  0xa5   : > { %v467_v40 = vadd.f32 %v942_v19, %v466_v38  ;;  %v487_v41 = vadd.f32 %v942_v19, %v486_v39  ;;  %v429_v42 = vpop.f32.mrf.mxu0  ;;  %v449_v43 = vpop.f32.mrf.mxu1 }
  0xa6   : > { %v430_v44 = vadd.f32 %v942_v19, %v429_v42  ;;  %v450_v45 = vadd.f32 %v942_v19, %v449_v43 }
  0xa7   : > { %v521_v46 = vmax.f32 %v467_v40, 0.0  ;;  %v529_v47 = vmax.f32 %v487_v41, 0.0 }
  0xa8   : > { %v506_v48 = vmax.f32 %v430_v44, 0.0  ;;  %v514_v49 = vmax.f32 %v450_v45, 0.0 }
  0xa9   : > { %553 = vst [vmem:[%s950_s5 + $0x88] sm:$0xff] %v521_v46 }
  0xaa   : > { %561 = vst [vmem:[%s950_s5 + $0xc8] sm:$0xff] %v529_v47 }
  0xab   : > { %538 = vst [vmem:[%s950_s5 + $0x10] sm:$0xff] %v506_v48 }
  0xac   : > { %546 = vst [vmem:[%s950_s5 + $0x50] sm:$0xff] %v514_v49  ;;  %v469_v50 = vpop.f32.mrf.mxu2  ;;  %v489_v51 = vpop.f32.mrf.mxu3 }
  0xad   : > { %v470_v52 = vadd.f32 %v942_v19, %v469_v50  ;;  %v490_v53 = vadd.f32 %v942_v19, %v489_v51  ;;  %v431_v54 = vpop.f32.mrf.mxu0  ;;  %v451_v55 = vpop.f32.mrf.mxu1 }
  0xae   : > { %v432_v56 = vadd.f32 %v942_v19, %v431_v54  ;;  %v452_v57 = vadd.f32 %v942_v19, %v451_v55 }
  0xaf   : > { %v522_v58 = vmax.f32 %v470_v52, 0.0  ;;  %v530_v59 = vmax.f32 %v490_v53, 0.0 }
  0xb0   : > { %v507_v60 = vmax.f32 %v432_v56, 0.0  ;;  %v515_v61 = vmax.f32 %v452_v57, 0.0 }
  0xb1   : > { %554 = vst [vmem:[%s950_s5 + $0x90] sm:$0xff] %v522_v58 }
  0xb2   : > { %562 = vst [vmem:[%s950_s5 + $0xd0] sm:$0xff] %v530_v59 }
  0xb3   : > { %539 = vst [vmem:[%s950_s5 + $0x18] sm:$0xff] %v507_v60 }
  0xb4   : > { %547 = vst [vmem:[%s950_s5 + $0x58] sm:$0xff] %v515_v61  ;;  %v471_v62 = vpop.f32.mrf.mxu2  ;;  %v491_v63 = vpop.f32.mrf.mxu3 }
  0xb5   : > { %v472_v0 = vadd.f32 %v942_v19, %v471_v62  ;;  %v492_v1 = vadd.f32 %v942_v19, %v491_v63  ;;  %v434_v2 = vpop.f32.mrf.mxu0  ;;  %v454_v3 = vpop.f32.mrf.mxu1 }
  0xb6   : > { %v435_v4 = vadd.f32 %v942_v19, %v434_v2  ;;  %v455_v5 = vadd.f32 %v942_v19, %v454_v3 }
  0xb7   : > { %v523_v6 = vmax.f32 %v472_v0, 0.0  ;;  %v531_v7 = vmax.f32 %v492_v1, 0.0 }
  0xb8   : > { %v508_v8 = vmax.f32 %v435_v4, 0.0  ;;  %v516_v9 = vmax.f32 %v455_v5, 0.0 }
  0xb9   : > { %555 = vst [vmem:[%s950_s5 + $0x98] sm:$0xff] %v523_v6 }
  0xba   : > { %563 = vst [vmem:[%s950_s5 + $0xd8] sm:$0xff] %v531_v7 }
  0xbb   : > { %540 = vst [vmem:[%s950_s5 + $0x20] sm:$0xff] %v508_v8 }
  0xbc   : > { %548 = vst [vmem:[%s950_s5 + $0x60] sm:$0xff] %v516_v9  ;;  %v474_v10 = vpop.f32.mrf.mxu2  ;;  %v494_v11 = vpop.f32.mrf.mxu3 }
  0xbd   : > { %v475_v12 = vadd.f32 %v942_v19, %v474_v10  ;;  %v495_v13 = vadd.f32 %v942_v19, %v494_v11  ;;  %v436_v14 = vpop.f32.mrf.mxu0  ;;  %v456_v15 = vpop.f32.mrf.mxu1 }
  0xbe   : > { %v437_v16 = vadd.f32 %v942_v19, %v436_v14  ;;  %v457_v17 = vadd.f32 %v942_v19, %v456_v15 }
  0xbf   : > { %v524_v18 = vmax.f32 %v475_v12, 0.0  ;;  %v532_v20 = vmax.f32 %v495_v13, 0.0 }
  0xc0   : > { %v509_v21 = vmax.f32 %v437_v16, 0.0  ;;  %v517_v22 = vmax.f32 %v457_v17, 0.0 }
  0xc1   : > { %556 = vst [vmem:[%s950_s5 + $0xa0] sm:$0xff] %v524_v18 }
  0xc2   : > { %564 = vst [vmem:[%s950_s5 + $0xe0] sm:$0xff] %v532_v20 }
  0xc3   : > { %541 = vst [vmem:[%s950_s5 + $0x28] sm:$0xff] %v509_v21 }
  0xc4   : > { %549 = vst [vmem:[%s950_s5 + $0x68] sm:$0xff] %v517_v22  ;;  %v476_v23 = vpop.f32.mrf.mxu2  ;;  %v496_v24 = vpop.f32.mrf.mxu3 }
  0xc5   : > { %v477_v25 = vadd.f32 %v942_v19, %v476_v23  ;;  %v497_v26 = vadd.f32 %v942_v19, %v496_v24  ;;  %v439_v27 = vpop.f32.mrf.mxu0  ;;  %v459_v28 = vpop.f32.mrf.mxu1 }
  0xc6   : > { %v440_v29 = vadd.f32 %v942_v19, %v439_v27  ;;  %v460_v30 = vadd.f32 %v942_v19, %v459_v28 }
  0xc7   : > { %v525_v31 = vmax.f32 %v477_v25, 0.0  ;;  %v533_v32 = vmax.f32 %v497_v26, 0.0 }
  0xc8   : > { %v510_v33 = vmax.f32 %v440_v29, 0.0  ;;  %v518_v34 = vmax.f32 %v460_v30, 0.0 }
  0xc9   : > { %557 = vst [vmem:[%s950_s5 + $0xa8] sm:$0xff] %v525_v31 }
  0xca   : > { %565 = vst [vmem:[%s950_s5 + $0xe8] sm:$0xff] %v533_v32 }
  0xcb   : > { %542 = vst [vmem:[%s950_s5 + $0x30] sm:$0xff] %v510_v33 }
  0xcc   : > { %550 = vst [vmem:[%s950_s5 + $0x70] sm:$0xff] %v518_v34  ;;  %v479_v35 = vpop.f32.mrf.mxu2  ;;  %v499_v36 = vpop.f32.mrf.mxu3 }
  0xcd   : > { %v480_v37 = vadd.f32 %v942_v19, %v479_v35  ;;  %v500_v38 = vadd.f32 %v942_v19, %v499_v36  ;;  %v441_v39 = vpop.f32.mrf.mxu0  ;;  %v461_v40 = vpop.f32.mrf.mxu1 }
  0xce   : > { %v442_v41 = vadd.f32 %v942_v19, %v441_v39  ;;  %v462_v42 = vadd.f32 %v942_v19, %v461_v40 }
  0xcf   : > { %v526_v43 = vmax.f32 %v480_v37, 0.0  ;;  %v534_v44 = vmax.f32 %v500_v38, 0.0 }
  0xd0   : > { %v511_v45 = vmax.f32 %v442_v41, 0.0  ;;  %v519_v46 = vmax.f32 %v462_v42, 0.0 }
  0xd1   : > { %558 = vst [vmem:[%s950_s5 + $0xb0] sm:$0xff] %v526_v43 }
  0xd2   : > { %566 = vst [vmem:[%s950_s5 + $0xf0] sm:$0xff] %v534_v44 }
  0xd3   : > { %543 = vst [vmem:[%s950_s5 + $0x38] sm:$0xff] %v511_v45 }
  0xd4   : > { %551 = vst [vmem:[%s950_s5 + $0x78] sm:$0xff] %v519_v46  ;;  %v481_v47 = vpop.f32.mrf.mxu2  ;;  %v501_v48 = vpop.f32.mrf.mxu3 }
  0xd5   : > { %v482_v49 = vadd.f32 %v942_v19, %v481_v47  ;;  %v502_v50 = vadd.f32 %v942_v19, %v501_v48 }
  0xd7   : > { %v527_v51 = vmax.f32 %v482_v49, 0.0  ;;  %v535_v52 = vmax.f32 %v502_v50, 0.0 }
  0xd9   : > { %559 = vst [vmem:[%s950_s5 + $0xb8] sm:$0xff] %v527_v51 }
  0xda   : > { %567 = vst [vmem:[%s950_s5 + $0xf8] sm:$0xff] %v535_v52 }
  0xdb PF: > { %s13_s14 = sadd.s32 1, %s850_s14   ;;  %s1027_s12 = smov %s846_s13 }
  0xdc   : > { %p10_p5 = scmp.ge.s32.totalorder %s13_s14, 4   ;;  %s1028_s13 = smov %s1030_s15 }
  0xde   :  { %12 = sbr.rel (!%p10_p5) target bundleno = 2 (0x2), region = 68 }

</bundles_post_ra>
